<compile_context>
chip_gen: v6e
topology: v6e:2x2x1
jax: 0.10.0
libtpu: 0.0.40
codegen_flags: <defaults>
</compile_context>

<pallas_src>
import functools

import jax
import jax.numpy as jnp
from jax.experimental import pallas as pl
from jax.experimental.pallas import tpu as pltpu


_LANE = 128                 # lane width (variable axis granularity)
_ROW_ALIGN = 32             # check-axis granularity (int8 sublane packing safe)
_FUSED_BYTES_PER_ELEM = 64  # conservative live-VMEM estimate for the fused kernel


def _vmem_config():
    """(scoped VMEM limit, double-buffered block-footprint budget) per generation."""
    limit = 48 * 1024 * 1024                    # safe everywhere (v7x: 64 MiB/TC physical)
    try:
        cap = int(pltpu.get_tpu_info().vmem_capacity_bytes)
        if cap >= 128 * 1024 * 1024:            # v5e / v6e have 128 MiB physical VMEM
            limit = 100 * 1024 * 1024
    except Exception:
        pass                                    # conservative fallback
    return limit, (2 * limit) // 3


_VMEM_LIMIT, _VMEM_BUDGET = _vmem_config()


def _round_up(a, b):
    return ((a + b - 1) // b) * b


def _pick_tile(total, unit, cap):
    """Largest multiple of `unit` that divides `total` and is <= max(cap, unit)."""
    t = min(total, max(unit, (cap // unit) * unit))
    while total % t:
        t -= unit
    return t


def _pick_tiles(k_pad, n_pad, budget):
    # bytes per double-buffered block element: i8 H + one f32 input + one f32 output
    per = 2 * (1 + 4 + 4)
    nt = _pick_tile(n_pad, _LANE, budget // (per * k_pad))       # pass-1 lane tile
    kt = _pick_tile(k_pad, _ROW_ALIGN, budget // (per * n_pad))  # pass-2 row tile
    return kt, nt


# --------------------------------------------------------------------------
# Shared math (operates on values, used by all kernel bodies)
# --------------------------------------------------------------------------
def _atanh(v):
    # Single-log atanh: one EUP log instead of two; matches torch.atanh at the
    # corner cases (+/-1 -> +/-inf, |v| > 1 -> NaN, NaN -> NaN).
    return 0.5 * jnp.log((1.0 + v) / (1.0 - v))


def _row_product(pvals):
    """Product over the lane (variable) axis of a (rows, n) block, n % 128 == 0.

    Fold the 128-lane groups with elementwise multiplies (~1 extra multiply per
    element), then a 7-step rotate-and-multiply tree (XLU roll + VPU mul) on the
    128-wide partial.  No power-of-two padding needed, no reliance on a native
    lane multiply-reduction lowering.
    """
    n = pvals.shape[-1]
    acc = pvals[:, 0:_LANE]
    # TODO(synk): for very large N switch this unrolled fold to a nested grid.
    for b in range(1, n // _LANE):
        acc = acc * pvals[:, b * _LANE:(b + 1) * _LANE]
    shift = 1
    while shift < _LANE:
        acc = acc * pltpu.roll(acc, shift=shift, axis=1)
        shift *= 2
    return acc[:, 0:1]            # every lane now holds the full row product


def _update_hsx(Hb, hxs, base):
    """Variable -> factor messages for one (rows, lanes) block (full K rows)."""
    inf_chk = jnp.isinf(hxs) & Hb
    s_cnt = jnp.sum(jnp.where(inf_chk, 1.0, 0.0), axis=0, keepdims=True)
    ll_sum = jnp.sum(jnp.where(Hb & (~inf_chk), hxs, 0.0), axis=0, keepdims=True)
    ss_sum = jnp.sum(jnp.where(inf_chk, hxs, 0.0), axis=0, keepdims=True)
    hsx_edge = jnp.where(
        s_cnt == 0.0, base + ll_sum - hxs,                         # no "sure" neighbor
        jnp.where(s_cnt == 1.0,
                  jnp.where(inf_chk, base + ll_sum, ss_sum),       # exactly one inf
                  jnp.where(jnp.isnan(ss_sum), 0.0, base + ss_sum)))  # more than one
    # Non-edge positions written as 0 (NON-EDGE INVARIANT): old Hsx never read.
    return jnp.where(Hb, hsx_edge, 0.0)


def _update_hxs(Hb, hsx, x):
    """Factor -> variable messages for one (rows, lanes) block (full N lanes)."""
    lld = jnp.where(Hb, jnp.tanh(hsx), 1.0)    # non-edges behave like the torch
    zero_chk = lld == 0.0                      # dummy column (tanh(inf) = 1)
    prod = _row_product(jnp.where(zero_chk, 1.0, lld))            # (rows, 1)
    llp = (1.0 - 2.0 * x) * prod                                  # (rows, 1)
    n0 = jnp.sum(jnp.where(zero_chk, 1.0, 0.0), axis=1, keepdims=True)
    # One shared atanh for all null-neighbor branches (atanh(0) == 0 covers
    # the "set to zero" cases); llp/lld is the leave-one-out product.
    arg = jnp.where(n0 == 0.0, llp / lld,
                    jnp.where((n0 == 1.0) & zero_chk, llp, 0.0))
    return jnp.where(Hb, _atanh(arg), 0.0)


def _mout_sums(hxs_new):
    """Partial column sums needed for M_out (hxs_new is 0 at non-edges)."""
    inf_edge = jnp.isinf(hxs_new)
    full = jnp.sum(hxs_new, axis=0, keepdims=True)
    noinf = jnp.sum(jnp.where(inf_edge, 0.0, hxs_new), axis=0, keepdims=True)
    infc = jnp.sum(jnp.where(inf_edge, 1.0, 0.0), axis=0, keepdims=True)
    return full, noinf, infc


def _mout_diff(full, noinf, infc):
    d = jnp.tanh(full)
    # Mixed-sign infinities make the column sum NaN; the torch module then
    # drops the infinite edge contributions and re-takes tanh of the rest.
    return jnp.where(jnp.isnan(d) & (infc > 0.0), jnp.tanh(noinf), d)


# --------------------------------------------------------------------------
# Kernels
# --------------------------------------------------------------------------
def _hsx_kernel(h_ref, hxs_ref, base_ref, hsx_out_ref):
    """Pass 1: block = (k_pad, nt), grid over the variable (lane) axis."""
    # TODO(synk): try Hb = h_ref[...] != 0 (saves the i8->f32 cast) once verified.
    Hb = h_ref[...].astype(jnp.float32) > 0.5
    hsx_out_ref[...] = _update_hsx(Hb, hxs_ref[...], base_ref[...])


def _hxs_kernel(h_ref, hsx_ref, x_ref, hxs_out_ref, psum_ref):
    """Pass 2: block = (kt, n_pad), grid over the check axis ("parallel")."""
    Hb = h_ref[...].astype(jnp.float32) > 0.5
    hxs_new = _update_hxs(Hb, hsx_ref[...], x_ref[...])
    hxs_out_ref[...] = hxs_new
    full, noinf, infc = _mout_sums(hxs_new)    # per-block partials, reduced in wrapper
    psum_ref[0:1, :] = full
    psum_ref[1:2, :] = noinf
    psum_ref[2:3, :] = infc


def _fused_kernel(h_ref, hxs_ref, base_ref, x_ref,
                  hsx_out_ref, hxs_out_ref, mout_ref):
    """Single-invocation path: both passes + M_out, messages stay in VMEM."""
    Hb = h_ref[...].astype(jnp.float32) > 0.5
    hsx_new = _update_hsx(Hb, hxs_ref[...], base_ref[...])
    hsx_out_ref[...] = hsx_new
    hxs_new = _update_hxs(Hb, hsx_new, x_ref[...])
    hxs_out_ref[...] = hxs_new
    d = _mout_diff(*_mout_sums(hxs_new))
    mout_ref[0:1, :] = 0.5 + 0.5 * d           # lane-dense row stores, no concat temp
    mout_ref[1:2, :] = 0.5 - 0.5 * d


# --------------------------------------------------------------------------
# Padded-layout step (use codebp_prepare + this for iterative BP: H converted
# once, messages kept in the padded layout, no per-iteration pad/slice copies)
# --------------------------------------------------------------------------
@functools.partial(jax.jit, static_argnames=("fused", "block_budget"))
def codebp_step_padded(h_i8, hxs_p, base_p, x_p, *, fused=None, block_budget=None):
    """One BP iteration on the padded layout.

    h_i8   : (k_pad, n_pad) int8 parity-check matrix (0/1, zero padded)
    hxs_p  : (k_pad, n_pad) f32 factor->variable messages (0 at non-edges / padding)
    base_p : (1, n_pad)     f32 per-variable prior LLR (0 in padding)
    x_p    : (k_pad, 1)     f32 syndrome bits (0 in padding)
    Returns (hsx_p_new, hxs_p_new, mout_p) with mout_p : (2, n_pad).
    """
    k_pad, n_pad = h_i8.shape
    budget = _VMEM_BUDGET if block_budget is None else block_budget
    if fused is None:
        fused = k_pad * n_pad * _FUSED_BYTES_PER_ELEM <= _VMEM_LIMIT

    if fused:
        return pl.pallas_call(
            _fused_kernel,
            grid=(1,),
            in_specs=[pl.BlockSpec((k_pad, n_pad), lambda i: (0, 0)),
                      pl.BlockSpec((k_pad, n_pad), lambda i: (0, 0)),
                      pl.BlockSpec((1, n_pad), lambda i: (0, 0)),
                      pl.BlockSpec((k_pad, 1), lambda i: (0, 0))],
            out_specs=(pl.BlockSpec((k_pad, n_pad), lambda i: (0, 0)),
                       pl.BlockSpec((k_pad, n_pad), lambda i: (0, 0)),
                       pl.BlockSpec((2, n_pad), lambda i: (0, 0))),
            out_shape=(jax.ShapeDtypeStruct((k_pad, n_pad), jnp.float32),
                       jax.ShapeDtypeStruct((k_pad, n_pad), jnp.float32),
                       jax.ShapeDtypeStruct((2, n_pad), jnp.float32)),
            compiler_params=pltpu.CompilerParams(vmem_limit_bytes=_VMEM_LIMIT),
        )(h_i8, hxs_p, base_p, x_p)

    kt, nt = _pick_tiles(k_pad, n_pad, budget)
    tiled_params = pltpu.CompilerParams(
        dimension_semantics=("parallel",),          # megacore-shardable on v7x
        vmem_limit_bytes=_VMEM_LIMIT)

    # ---- pass 1: Hsx update, tiled over the variable (lane) axis ----------
    hsx_new = pl.pallas_call(
        _hsx_kernel,
        grid=(n_pad // nt,),
        in_specs=[pl.BlockSpec((k_pad, nt), lambda j: (0, j)),
                  pl.BlockSpec((k_pad, nt), lambda j: (0, j)),
                  pl.BlockSpec((1, nt), lambda j: (0, j))],
        out_specs=pl.BlockSpec((k_pad, nt), lambda j: (0, j)),
        out_shape=jax.ShapeDtypeStruct((k_pad, n_pad), jnp.float32),
        compiler_params=tiled_params,
    )(h_i8, hxs_p, base_p)

    # ---- pass 2: Hxs update + per-block M_out partial sums ----------------
    kb = k_pad // kt
    hxs_new, psums = pl.pallas_call(
        _hxs_kernel,
        grid=(kb,),
        in_specs=[pl.BlockSpec((kt, n_pad), lambda i: (i, 0)),
                  pl.BlockSpec((kt, n_pad), lambda i: (i, 0)),
                  pl.BlockSpec((kt, 1), lambda i: (i, 0))],
        out_specs=(pl.BlockSpec((kt, n_pad), lambda i: (i, 0)),
                   pl.BlockSpec((None, 3, n_pad), lambda i: (i, 0, 0))),
        out_shape=(jax.ShapeDtypeStruct((k_pad, n_pad), jnp.float32),
                   jax.ShapeDtypeStruct((kb, 3, n_pad), jnp.float32)),
        compiler_params=tiled_params,
    )(h_i8, hsx_new, x_p)

    # Tiny (kb, 3, N) reduction + finalize in the wrapper (keeps pass 2 parallel).
    sums = jnp.sum(psums, axis=0)                            # (3, n_pad)
    d = _mout_diff(sums[0:1, :], sums[1:2, :], sums[2:3, :])
    mout = jnp.concatenate([0.5 + 0.5 * d, 0.5 - 0.5 * d], axis=0)
    return hsx_new, hxs_new, mout


def codebp_prepare(H):
    """Convert/pad H once (H is static across BP iterations)."""
    K, N = H.shape
    k_pad = _round_up(max(K, 1), _ROW_ALIGN)
    n_pad = _round_up(max(N, 1), _LANE)
    h_i8 = (jnp.asarray(H, jnp.float32) > 0.5).astype(jnp.int8)
    h_i8 = jnp.pad(h_i8, ((0, k_pad - K), (0, n_pad - N)))
    return h_i8, k_pad, n_pad


@functools.partial(jax.jit, static_argnames=("fused", "block_budget"))
def codebp_forward(H, Hsx, Hxs, ps, x, Min=None, *, fused=None, block_budget=None):
    """One CodeBP forward iteration (convenience, unpadded (K, N) interface).

    H   : (K, N) 0/1 parity-check matrix
    Hsx : (K, N) variable->factor messages -- accepted for interface parity but
          unused: the torch forward overwrites every Hsx edge before reading it,
          and non-edge entries are assumed 0 (NON-EDGE INVARIANT).
    Hxs : (K, N) factor->variable messages (non-edge entries assumed 0)
    ps  : (N, 2) source priors
    x   : (K, 1) syndrome bits
    Min : (N, 2) incoming messages (or None -> 0.5)
    returns (Hsx_new, Hxs_new, M_out) with M_out : (N, 2)
    """
    del Hsx  # see docstring
    K, N = H.shape
    if Min is None:
        Min = jnp.full((N, 2), 0.5, jnp.float32)
    ps = jnp.asarray(ps, jnp.float32)
    Min = jnp.asarray(Min, jnp.float32)

    h_i8, k_pad, n_pad = codebp_prepare(H)
    hxs_p = jnp.pad(jnp.asarray(Hxs, jnp.float32), ((0, k_pad - K), (0, n_pad - N)))
    x_p = jnp.pad(jnp.asarray(x, jnp.float32).reshape(K, 1), ((0, k_pad - K), (0, 0)))
    # Per-variable prior LLR hoisted out of the kernels (O(N) work).
    base = (0.5 * (jnp.log(Min[:, 0]) - jnp.log(Min[:, 1]))
            + 0.5 * (jnp.log(ps[:, 0]) - jnp.log(ps[:, 1])))
    base_p = jnp.pad(base.reshape(1, N), ((0, 0), (0, n_pad - N)))

    hsx_p, hxs_p_new, mout_p = codebp_step_padded(
        h_i8, hxs_p, base_p, x_p, fused=fused, block_budget=block_budget)
    return hsx_p[:K, :N], hxs_p_new[:K, :N], mout_p[:, :N].T


# --------------------------------------------------------------------------
# Pure-JAX dense reference (same masked formulation, no Pallas) for validation
# --------------------------------------------------------------------------
def _reference_forward(H, Hsx, Hxs, ps, x, Min):
    H = jnp.asarray(H, jnp.float32)
    Hsx = jnp.asarray(Hsx, jnp.float32)
    Hxs = jnp.asarray(Hxs, jnp.float32)
    ps = jnp.asarray(ps, jnp.float32)
    Min = jnp.asarray(Min, jnp.float32)
    x = jnp.asarray(x, jnp.float32)

    Hb = H > 0.5
    base = (0.5 * (jnp.log(Min[:, 0]) - jnp.log(Min[:, 1]))
            + 0.5 * (jnp.log(ps[:, 0]) - jnp.log(ps[:, 1])))[None, :]

    inf_chk = jnp.isinf(Hxs) & Hb
    s_cnt = jnp.sum(inf_chk.astype(jnp.float32), axis=0, keepdims=True)
    ll_sum = jnp.sum(jnp.where(Hb & ~inf_chk, Hxs, 0.0), axis=0, keepdims=True)
    ss_sum = jnp.sum(jnp.where(inf_chk, Hxs, 0.0), axis=0, keepdims=True)
    hsx_edge = jnp.where(s_cnt == 0.0, base + ll_sum - Hxs,
                         jnp.where(s_cnt == 1.0,
                                   jnp.where(inf_chk, base + ll_sum, ss_sum),
                                   jnp.where(jnp.isnan(ss_sum), 0.0, base + ss_sum)))
    Hsx_new = jnp.where(Hb, hsx_edge, Hsx)

    lld = jnp.where(Hb, jnp.tanh(Hsx_new), 1.0)
    zero_chk = Hb & (lld == 0.0)
    prod = jnp.prod(jnp.where(zero_chk, 1.0, lld), axis=1, keepdims=True)
    llp = (1.0 - 2.0 * x) * prod
    n0 = jnp.sum(zero_chk.astype(jnp.float32), axis=1, keepdims=True)
    hxs_edge = jnp.where(n0 == 0.0, jnp.arctanh(llp / lld),
                         jnp.where((n0 == 1.0) & zero_chk, jnp.arctanh(llp), 0.0))
    Hxs_new = jnp.where(Hb, hxs_edge, Hxs)

    hxs_e = jnp.where(Hb, Hxs_new, 0.0)
    d = jnp.tanh(jnp.sum(hxs_e, axis=0, keepdims=True))
    nan_chk = jnp.isnan(d) & jnp.isinf(Hxs_new) & Hb
    d = jnp.where(jnp.any(nan_chk, axis=0, keepdims=True),
                  jnp.tanh(jnp.sum(jnp.where(nan_chk, 0.0, hxs_e),
                                   axis=0, keepdims=True)), d)
    M_out = jnp.concatenate([0.5 + 0.5 * d.T, 0.5 - 0.5 * d.T], axis=1)
    return Hsx_new, Hxs_new, M_out


if __name__ == "__main__":
    def make_H(K, N, offsets=(0, 1, 3)):
        rows = [[0] * N for _ in range(K)]
        for i in range(N):
            for off in offsets:
                rows[(i + off) % K][i] = 1
        return jnp.array(rows, jnp.float32)

    def make_inputs(key, K, N):
        k1, k2, k3 = jax.random.split(key, 3)
        ps = jax.random.uniform(k1, (N, 2), minval=0.1, maxval=1.0)
        ps = ps / ps.sum(axis=1, keepdims=True)
        Min = jax.random.uniform(k2, (N, 2), minval=0.1, maxval=1.0)
        Min = Min / Min.sum(axis=1, keepdims=True)
        x = jax.random.bernoulli(k3, 0.5, (K, 1)).astype(jnp.float32)
        return ps, x, Min

    def check(got, want):
        got = jax.block_until_ready(got)
        for a, b in zip(got, want):
            assert a.shape == b.shape, (a.shape, b.shape)
            assert bool(jnp.allclose(a, b, rtol=1e-5, atol=1e-5))

    key = jax.random.PRNGKey(0)
    k_small, k_big = jax.random.split(key)

    # -- test 1: small (3,6)-regular code, fused single-kernel path ---------
    K1, N1 = 8, 16
    H1 = make_H(K1, N1)
    ps1, x1, Min1 = make_inputs(k_small, K1, N1)
    Hsx0 = jnp.zeros((K1, N1), jnp.float32)
    Hxs0 = jnp.zeros((K1, N1), jnp.float32)
    out = codebp_forward(H1, Hsx0, Hxs0, ps1, x1, Min1)
    ref = _reference_forward(H1, Hsx0, Hxs0, ps1, x1, Min1)
    check(out, ref)

    # -- test 2: "sure" (+inf) incoming messages on variable 0's edges ------
    Hxs_inf = Hxs0.at[jnp.array([0, 1, 3]), 0].set(jnp.inf)
    ref = _reference_forward(H1, Hsx0, Hxs_inf, ps1, x1, Min1)
    check(codebp_forward(H1, Hsx0, Hxs_inf, ps1, x1, Min1), ref)
    check(codebp_forward(H1, Hsx0, Hxs_inf, ps1, x1, Min1, fused=False), ref)

    # -- test 3: bigger code, two-pass tiled path with a multi-block grid ---
    K2, N2 = 64, 512
    H2 = make_H(K2, N2)
    ps2, x2, Min2 = make_inputs(k_big, K2, N2)
    Z2 = jnp.zeros((K2, N2), jnp.float32)
    out = codebp_forward(H2, Z2, Z2, ps2, x2, Min2,
                         fused=False, block_budget=96 * 1024)
    ref = _reference_forward(H2, Z2, Z2, ps2, x2, Min2)
    check(out, ref)

    print("KERNEL_OK")
</pallas_src>

<mosaic_0001>
module attributes {stable_mosaic.version = 11 : i64} {
  func.func @_fused_kernel(%arg0: i32, %arg1: memref<32x128xi8, #tpu.memory_space<vmem>>, %arg2: memref<32x128xf32, #tpu.memory_space<vmem>>, %arg3: memref<1x128xf32, #tpu.memory_space<vmem>>, %arg4: memref<32x1xf32, #tpu.memory_space<vmem>>, %arg5: memref<32x128xf32, #tpu.memory_space<vmem>>, %arg6: memref<32x128xf32, #tpu.memory_space<vmem>>, %arg7: memref<2x128xf32, #tpu.memory_space<vmem>>) attributes {dimension_semantics = [#tpu.dimension_semantics<arbitrary>], iteration_bounds = array<i64: 1>, scalar_prefetch = 0 : i64, scratch_operands = 0 : i64, tpu.core_type = #tpu.core_type<tc>, window_params = [{pipeline_mode = #tpu.pipeline_mode<synchronous>, transform_indices = @transform_0, window_bounds = array<i64: 32, 128>}, {pipeline_mode = #tpu.pipeline_mode<synchronous>, transform_indices = @transform_1, window_bounds = array<i64: 32, 128>}, {pipeline_mode = #tpu.pipeline_mode<synchronous>, transform_indices = @transform_2, window_bounds = array<i64: 1, 128>}, {pipeline_mode = #tpu.pipeline_mode<synchronous>, transform_indices = @transform_3, window_bounds = array<i64: 32, 1>}, {pipeline_mode = #tpu.pipeline_mode<synchronous>, transform_indices = @transform_4, window_bounds = array<i64: 32, 128>}, {pipeline_mode = #tpu.pipeline_mode<synchronous>, transform_indices = @transform_5, window_bounds = array<i64: 32, 128>}, {pipeline_mode = #tpu.pipeline_mode<synchronous>, transform_indices = @transform_6, window_bounds = array<i64: 2, 128>}]} {
    %c0 = arith.constant 0 : index
    %c0_0 = arith.constant 0 : index
    %0 = vector.load %arg1[%c0, %c0_0] : memref<32x128xi8, #tpu.memory_space<vmem>>, vector<32x128xi8>
    %1 = arith.sitofp %0 : vector<32x128xi8> to vector<32x128xf32>
    %cst = arith.constant 5.000000e-01 : f32
    %2 = vector.broadcast %cst : f32 to vector<32x128xf32>
    %3 = arith.cmpf ogt, %1, %2 : vector<32x128xf32>
    %c0_1 = arith.constant 0 : index
    %c0_2 = arith.constant 0 : index
    %4 = vector.load %arg2[%c0_1, %c0_2] : memref<32x128xf32, #tpu.memory_space<vmem>>, vector<32x128xf32>
    %c0_3 = arith.constant 0 : index
    %c0_4 = arith.constant 0 : index
    %5 = vector.load %arg3[%c0_3, %c0_4] : memref<1x128xf32, #tpu.memory_space<vmem>>, vector<1x128xf32>
    %6 = math.absf %4 : vector<32x128xf32>
    %cst_5 = arith.constant 0x7F800000 : f32
    %7 = vector.broadcast %cst_5 : f32 to vector<32x128xf32>
    %8 = arith.cmpf oeq, %6, %7 : vector<32x128xf32>
    %9 = arith.andi %8, %3 : vector<32x128xi1>
    %cst_6 = arith.constant 1.000000e+00 : f32
    %cst_7 = arith.constant 0.000000e+00 : f32
    %10 = vector.broadcast %cst_6 : f32 to vector<32x128xf32>
    %11 = vector.broadcast %cst_7 : f32 to vector<32x128xf32>
    %12 = arith.select %9, %10, %11 : vector<32x128xi1>, vector<32x128xf32>
    %cst_8 = arith.constant dense<0.000000e+00> : vector<128xf32>
    %13 = vector.multi_reduction <add>, %12, %cst_8 [0] : vector<32x128xf32> to vector<128xf32>
    %14 = vector.shape_cast %13 : vector<128xf32> to vector<1x128xf32>
    %cst_9 = arith.constant dense<true> : vector<32x128xi1>
    %15 = arith.xori %9, %cst_9 : vector<32x128xi1>
    %16 = arith.andi %3, %15 : vector<32x128xi1>
    %cst_10 = arith.constant 0.000000e+00 : f32
    %17 = vector.broadcast %cst_10 : f32 to vector<32x128xf32>
    %18 = arith.select %16, %4, %17 : vector<32x128xi1>, vector<32x128xf32>
    %cst_11 = arith.constant dense<0.000000e+00> : vector<128xf32>
    %19 = vector.multi_reduction <add>, %18, %cst_11 [0] : vector<32x128xf32> to vector<128xf32>
    %20 = vector.shape_cast %19 : vector<128xf32> to vector<1x128xf32>
    %cst_12 = arith.constant 0.000000e+00 : f32
    %21 = vector.broadcast %cst_12 : f32 to vector<32x128xf32>
    %22 = arith.select %9, %4, %21 : vector<32x128xi1>, vector<32x128xf32>
    %cst_13 = arith.constant dense<0.000000e+00> : vector<128xf32>
    %23 = vector.multi_reduction <add>, %22, %cst_13 [0] : vector<32x128xf32> to vector<128xf32>
    %24 = vector.shape_cast %23 : vector<128xf32> to vector<1x128xf32>
    %cst_14 = arith.constant 0.000000e+00 : f32
    %25 = vector.broadcast %cst_14 : f32 to vector<1x128xf32>
    %26 = arith.cmpf oeq, %14, %25 : vector<1x128xf32>
    %27 = arith.addf %5, %20 : vector<1x128xf32>
    %28 = vector.broadcast %27 : vector<1x128xf32> to vector<32x128xf32>
    %29 = arith.subf %28, %4 : vector<32x128xf32>
    %cst_15 = arith.constant 1.000000e+00 : f32
    %30 = vector.broadcast %cst_15 : f32 to vector<1x128xf32>
    %31 = arith.cmpf oeq, %14, %30 : vector<1x128xf32>
    %32 = arith.addf %5, %20 : vector<1x128xf32>
    %33 = vector.shape_cast %32 : vector<1x128xf32> to vector<1x128xf32>
    %34 = vector.broadcast %33 : vector<1x128xf32> to vector<32x128xf32>
    %35 = vector.shape_cast %24 : vector<1x128xf32> to vector<1x128xf32>
    %36 = vector.broadcast %35 : vector<1x128xf32> to vector<32x128xf32>
    %37 = arith.select %9, %34, %36 : vector<32x128xi1>, vector<32x128xf32>
    %38 = arith.cmpf one, %24, %24 : vector<1x128xf32>
    %39 = arith.addf %5, %24 : vector<1x128xf32>
    %cst_16 = arith.constant 0.000000e+00 : f32
    %40 = vector.broadcast %cst_16 : f32 to vector<1x128xf32>
    %41 = arith.select %38, %40, %39 : vector<1x128xi1>, vector<1x128xf32>
    %42 = vector.shape_cast %31 : vector<1x128xi1> to vector<1x128xi1>
    %43 = vector.broadcast %42 : vector<1x128xi1> to vector<32x128xi1>
    %44 = vector.shape_cast %41 : vector<1x128xf32> to vector<1x128xf32>
    %45 = vector.broadcast %44 : vector<1x128xf32> to vector<32x128xf32>
    %46 = arith.select %43, %37, %45 : vector<32x128xi1>, vector<32x128xf32>
    %47 = vector.shape_cast %26 : vector<1x128xi1> to vector<1x128xi1>
    %48 = vector.broadcast %47 : vector<1x128xi1> to vector<32x128xi1>
    %49 = arith.select %48, %29, %46 : vector<32x128xi1>, vector<32x128xf32>
    %cst_17 = arith.constant 0.000000e+00 : f32
    %50 = vector.broadcast %cst_17 : f32 to vector<32x128xf32>
    %51 = arith.select %3, %49, %50 : vector<32x128xi1>, vector<32x128xf32>
    %c0_18 = arith.constant 0 : index
    %c0_19 = arith.constant 0 : index
    %52 = vector.load %arg5[%c0_18, %c0_19] : memref<32x128xf32, #tpu.memory_space<vmem>>, vector<32x128xf32>
    tpu.vector_store %arg5[%c0_18, %c0_19], %51 {strides = array<i32>} : memref<32x128xf32, #tpu.memory_space<vmem>>, vector<32x128xf32>,
    %c0_20 = arith.constant 0 : index
    %c0_21 = arith.constant 0 : index
    %53 = vector.load %arg4[%c0_20, %c0_21] : memref<32x1xf32, #tpu.memory_space<vmem>>, vector<32x1xf32>
    %54 = math.tanh %51 : vector<32x128xf32>
    %cst_22 = arith.constant 1.000000e+00 : f32
    %55 = vector.broadcast %cst_22 : f32 to vector<32x128xf32>
    %56 = arith.select %3, %54, %55 : vector<32x128xi1>, vector<32x128xf32>
    %cst_23 = arith.constant 0.000000e+00 : f32
    %57 = vector.broadcast %cst_23 : f32 to vector<32x128xf32>
    %58 = arith.cmpf oeq, %56, %57 : vector<32x128xf32>
    %cst_24 = arith.constant 1.000000e+00 : f32
    %59 = vector.broadcast %cst_24 : f32 to vector<32x128xf32>
    %60 = arith.select %58, %59, %56 : vector<32x128xi1>, vector<32x128xf32>
    %c1_i32 = arith.constant 1 : i32
    %61 = tpu.dynamic_rotate %60 by %c1_i32 dim 1 : vector<32x128xf32>, i32 -> vector<32x128xf32>
    %62 = arith.mulf %60, %61 : vector<32x128xf32>
    %c2_i32 = arith.constant 2 : i32
    %63 = tpu.dynamic_rotate %62 by %c2_i32 dim 1 : vector<32x128xf32>, i32 -> vector<32x128xf32>
    %64 = arith.mulf %62, %63 : vector<32x128xf32>
    %c4_i32 = arith.constant 4 : i32
    %65 = tpu.dynamic_rotate %64 by %c4_i32 dim 1 : vector<32x128xf32>, i32 -> vector<32x128xf32>
    %66 = arith.mulf %64, %65 : vector<32x128xf32>
    %c8_i32 = arith.constant 8 : i32
    %67 = tpu.dynamic_rotate %66 by %c8_i32 dim 1 : vector<32x128xf32>, i32 -> vector<32x128xf32>
    %68 = arith.mulf %66, %67 : vector<32x128xf32>
    %c16_i32 = arith.constant 16 : i32
    %69 = tpu.dynamic_rotate %68 by %c16_i32 dim 1 : vector<32x128xf32>, i32 -> vector<32x128xf32>
    %70 = arith.mulf %68, %69 : vector<32x128xf32>
    %c32_i32 = arith.constant 32 : i32
    %71 = tpu.dynamic_rotate %70 by %c32_i32 dim 1 : vector<32x128xf32>, i32 -> vector<32x128xf32>
    %72 = arith.mulf %70, %71 : vector<32x128xf32>
    %c64_i32 = arith.constant 64 : i32
    %73 = tpu.dynamic_rotate %72 by %c64_i32 dim 1 : vector<32x128xf32>, i32 -> vector<32x128xf32>
    %74 = arith.mulf %72, %73 : vector<32x128xf32>
    %75 = vector.extract_strided_slice %74 {offsets = [0, 0], sizes = [32, 1], strides = [1, 1]} : vector<32x128xf32> to vector<32x1xf32>
    %cst_25 = arith.constant 2.000000e+00 : f32
    %76 = vector.broadcast %cst_25 : f32 to vector<32x1xf32>
    %77 = arith.mulf %76, %53 : vector<32x1xf32>
    %cst_26 = arith.constant 1.000000e+00 : f32
    %78 = vector.broadcast %cst_26 : f32 to vector<32x1xf32>
    %79 = arith.subf %78, %77 : vector<32x1xf32>
    %80 = arith.mulf %79, %75 : vector<32x1xf32>
    %cst_27 = arith.constant 1.000000e+00 : f32
    %cst_28 = arith.constant 0.000000e+00 : f32
    %81 = vector.broadcast %cst_27 : f32 to vector<32x128xf32>
    %82 = vector.broadcast %cst_28 : f32 to vector<32x128xf32>
    %83 = arith.select %58, %81, %82 : vector<32x128xi1>, vector<32x128xf32>
    %cst_29 = arith.constant dense<0.000000e+00> : vector<32xf32>
    %84 = vector.multi_reduction <add>, %83, %cst_29 [1] : vector<32x128xf32> to vector<32xf32>
    %85 = vector.shape_cast %84 : vector<32xf32> to vector<32x1xf32>
    %cst_30 = arith.constant 0.000000e+00 : f32
    %86 = vector.broadcast %cst_30 : f32 to vector<32x1xf32>
    %87 = arith.cmpf oeq, %85, %86 : vector<32x1xf32>
    %88 = vector.broadcast %80 : vector<32x1xf32> to vector<32x128xf32>
    %89 = arith.divf %88, %56 : vector<32x128xf32>
    %cst_31 = arith.constant 1.000000e+00 : f32
    %90 = vector.broadcast %cst_31 : f32 to vector<32x1xf32>
    %91 = arith.cmpf oeq, %85, %90 : vector<32x1xf32>
    %92 = vector.broadcast %91 : vector<32x1xi1> to vector<32x128xi1>
    %93 = arith.andi %92, %58 : vector<32x128xi1>
    %cst_32 = arith.constant 0.000000e+00 : f32
    %94 = vector.shape_cast %80 : vector<32x1xf32> to vector<32x1xf32>
    %95 = vector.broadcast %94 : vector<32x1xf32> to vector<32x128xf32>
    %96 = vector.broadcast %cst_32 : f32 to vector<32x128xf32>
    %97 = arith.select %93, %95, %96 : vector<32x128xi1>, vector<32x128xf32>
    %98 = vector.shape_cast %87 : vector<32x1xi1> to vector<32x1xi1>
    %99 = vector.broadcast %98 : vector<32x1xi1> to vector<32x128xi1>
    %100 = arith.select %99, %89, %97 : vector<32x128xi1>, vector<32x128xf32>
    %cst_33 = arith.constant 1.000000e+00 : f32
    %101 = vector.broadcast %cst_33 : f32 to vector<32x128xf32>
    %102 = arith.addf %101, %100 : vector<32x128xf32>
    %cst_34 = arith.constant 1.000000e+00 : f32
    %103 = vector.broadcast %cst_34 : f32 to vector<32x128xf32>
    %104 = arith.subf %103, %100 : vector<32x128xf32>
    %105 = arith.divf %102, %104 : vector<32x128xf32>
    %106 = math.log %105 : vector<32x128xf32>
    %cst_35 = arith.constant 5.000000e-01 : f32
    %107 = vector.broadcast %cst_35 : f32 to vector<32x128xf32>
    %108 = arith.mulf %107, %106 : vector<32x128xf32>
    %cst_36 = arith.constant 0.000000e+00 : f32
    %109 = vector.broadcast %cst_36 : f32 to vector<32x128xf32>
    %110 = arith.select %3, %108, %109 : vector<32x128xi1>, vector<32x128xf32>
    %c0_37 = arith.constant 0 : index
    %c0_38 = arith.constant 0 : index
    %111 = vector.load %arg6[%c0_37, %c0_38] : memref<32x128xf32, #tpu.memory_space<vmem>>, vector<32x128xf32>
    tpu.vector_store %arg6[%c0_37, %c0_38], %110 {strides = array<i32>} : memref<32x128xf32, #tpu.memory_space<vmem>>, vector<32x128xf32>,
    %112 = math.absf %110 : vector<32x128xf32>
    %cst_39 = arith.constant 0x7F800000 : f32
    %113 = vector.broadcast %cst_39 : f32 to vector<32x128xf32>
    %114 = arith.cmpf oeq, %112, %113 : vector<32x128xf32>
    %cst_40 = arith.constant dense<0.000000e+00> : vector<128xf32>
    %115 = vector.multi_reduction <add>, %110, %cst_40 [0] : vector<32x128xf32> to vector<128xf32>
    %116 = vector.shape_cast %115 : vector<128xf32> to vector<1x128xf32>
    %cst_41 = arith.constant 0.000000e+00 : f32
    %117 = vector.broadcast %cst_41 : f32 to vector<32x128xf32>
    %118 = arith.select %114, %117, %110 : vector<32x128xi1>, vector<32x128xf32>
    %cst_42 = arith.constant dense<0.000000e+00> : vector<128xf32>
    %119 = vector.multi_reduction <add>, %118, %cst_42 [0] : vector<32x128xf32> to vector<128xf32>
    %120 = vector.shape_cast %119 : vector<128xf32> to vector<1x128xf32>
    %cst_43 = arith.constant 1.000000e+00 : f32
    %cst_44 = arith.constant 0.000000e+00 : f32
    %121 = vector.broadcast %cst_43 : f32 to vector<32x128xf32>
    %122 = vector.broadcast %cst_44 : f32 to vector<32x128xf32>
    %123 = arith.select %114, %121, %122 : vector<32x128xi1>, vector<32x128xf32>
    %cst_45 = arith.constant dense<0.000000e+00> : vector<128xf32>
    %124 = vector.multi_reduction <add>, %123, %cst_45 [0] : vector<32x128xf32> to vector<128xf32>
    %125 = vector.shape_cast %124 : vector<128xf32> to vector<1x128xf32>
    %126 = math.tanh %116 : vector<1x128xf32>
    %127 = arith.cmpf one, %126, %126 : vector<1x128xf32>
    %cst_46 = arith.constant 0.000000e+00 : f32
    %128 = vector.broadcast %cst_46 : f32 to vector<1x128xf32>
    %129 = arith.cmpf ogt, %125, %128 : vector<1x128xf32>
    %130 = arith.andi %127, %129 : vector<1x128xi1>
    %131 = math.tanh %120 : vector<1x128xf32>
    %132 = arith.select %130, %131, %126 : vector<1x128xi1>, vector<1x128xf32>
    %cst_47 = arith.constant 5.000000e-01 : f32
    %133 = vector.broadcast %cst_47 : f32 to vector<1x128xf32>
    %134 = arith.mulf %133, %132 : vector<1x128xf32>
    %cst_48 = arith.constant 5.000000e-01 : f32
    %135 = vector.broadcast %cst_48 : f32 to vector<1x128xf32>
    %136 = arith.addf %135, %134 : vector<1x128xf32>
    %c0_49 = arith.constant 0 : index
    %c0_50 = arith.constant 0 : index
    %137 = vector.load %arg7[%c0_49, %c0_50] : memref<2x128xf32, #tpu.memory_space<vmem>>, vector<1x128xf32>
    tpu.vector_store %arg7[%c0_49, %c0_50], %136 {strides = array<i32>} : memref<2x128xf32, #tpu.memory_space<vmem>>, vector<1x128xf32>,
    %cst_51 = arith.constant 5.000000e-01 : f32
    %138 = vector.broadcast %cst_51 : f32 to vector<1x128xf32>
    %139 = arith.mulf %138, %132 : vector<1x128xf32>
    %cst_52 = arith.constant 5.000000e-01 : f32
    %140 = vector.broadcast %cst_52 : f32 to vector<1x128xf32>
    %141 = arith.subf %140, %139 : vector<1x128xf32>
    %c1 = arith.constant 1 : index
    %c0_53 = arith.constant 0 : index
    %142 = vector.load %arg7[%c1, %c0_53] : memref<2x128xf32, #tpu.memory_space<vmem>>, vector<1x128xf32>
    tpu.vector_store %arg7[%c1, %c0_53], %141 {strides = array<i32>} : memref<2x128xf32, #tpu.memory_space<vmem>>, vector<1x128xf32>,
    return
  }
  func.func @transform_0(%arg0: i32) -> (i32, i32) {
    %c0_i32 = arith.constant 0 : i32
    %c0_i32_0 = arith.constant 0 : i32
    %c0_i32_1 = arith.constant 0 : i32
    return %c0_i32, %c0_i32_0 : i32, i32
  }
  func.func @transform_1(%arg0: i32) -> (i32, i32) {
    %c0_i32 = arith.constant 0 : i32
    %c0_i32_0 = arith.constant 0 : i32
    %c0_i32_1 = arith.constant 0 : i32
    return %c0_i32, %c0_i32_0 : i32, i32
  }
  func.func @transform_2(%arg0: i32) -> (i32, i32) {
    %c0_i32 = arith.constant 0 : i32
    %c0_i32_0 = arith.constant 0 : i32
    %c0_i32_1 = arith.constant 0 : i32
    return %c0_i32, %c0_i32_0 : i32, i32
  }
  func.func @transform_3(%arg0: i32) -> (i32, i32) {
    %c0_i32 = arith.constant 0 : i32
    %c0_i32_0 = arith.constant 0 : i32
    %c0_i32_1 = arith.constant 0 : i32
    return %c0_i32, %c0_i32_0 : i32, i32
  }
  func.func @transform_4(%arg0: i32) -> (i32, i32) {
    %c0_i32 = arith.constant 0 : i32
    %c0_i32_0 = arith.constant 0 : i32
    %c0_i32_1 = arith.constant 0 : i32
    return %c0_i32, %c0_i32_0 : i32, i32
  }
  func.func @transform_5(%arg0: i32) -> (i32, i32) {
    %c0_i32 = arith.constant 0 : i32
    %c0_i32_0 = arith.constant 0 : i32
    %c0_i32_1 = arith.constant 0 : i32
    return %c0_i32, %c0_i32_0 : i32, i32
  }
  func.func @transform_6(%arg0: i32) -> (i32, i32) {
    %c0_i32 = arith.constant 0 : i32
    %c0_i32_0 = arith.constant 0 : i32
    %c0_i32_1 = arith.constant 0 : i32
    return %c0_i32, %c0_i32_0 : i32, i32
  }
}

</mosaic_0001>

<bundles_post_ra>
// kernel: codebp_step_padded.1
= control target key start
LH: loop header
LB: loop body
LE: loop exit
PB: predicated region body
PF: predicated region fallthrough
CT: control target
= control target key end

     0   :  { %12 = vsyncpa [#allocation3], 0  ;;  %s926_s0 = inlined_call_operand.hbm [shape: s8[32,128], index: 0, kind: input, shape index: {}]   ;;  %s927_s1 = inlined_call_operand.vmem [shape: f32[32,128], index: 1, kind: input, shape index: {}]   ;;  %s928_s2 = inlined_call_operand.vmem [shape: f32[1,128], index: 2, kind: input, shape index: {}]   ;;  %s929_s3 = inlined_call_operand.vmem [shape: f32[32,1], index: 3, kind: input, shape index: {}]   ;;  %s930_s4 = inlined_call_operand.hbm [shape: f32[32,128], index: 4, kind: output, shape index: {0}]   ;;  %s931_s5 = inlined_call_operand.hbm [shape: f32[32,128], index: 5, kind: output, shape index: {1}]   ;;  %s932_s6 = inlined_call_operand.hbm [shape: f32[2,128], index: 6, kind: output, shape index: {2}]  }
   0x1   :  { %13 = vsyncpa [#allocation4], 0 }
   0x2   :  { %14 = vsyncpa [#allocation7], 0  ;;  %s622_s21 = smov [#allocation2]  }
   0x3   :  { %s21_s22 = sshll.u32 %s622_s21, 4  ;;  %s22_s22 = int_to_ptr.vmem [resolvable:$true] %s21_s22 }
   0x4   :  { %s544_s23 = scalar_lea.vmem %s22_s22, 128  ;;  %p549_p1 = scmp.lt.s32.totalorder %s22_s22, %s22_s22 }
   0x5   :  { %p545_p0 = scmp.ne.s32.totalorder %s22_s22, %s544_s23  ;;  %p550_p2 = scmp.lt.s32.totalorder %s544_s23, %s544_s23 }
   0x7   :  { %p551_p3 = por %p550_p2, %p549_p1 }
   0x9   :  { %p552_p4 = pnand %p551_p3, %p545_p0 }
   0xb   :  { %555 = shalt.err (!%p552_p4)
}
   0xc   :  { %24 = dma.hbm_to_vmem [thread:$0]  %s926_s0, 128, %s22_s22, [#allocation3]  }
   0xd   :  { %616 = dma.done.wait [#allocation3], 128  }
   0xe   :  { %617 = vsyncadd [#allocation3], 4294967168  ;;  %v34_v0 = vld [vmem:[#allocation2] sm:$0xff]  ;;  %v683_v2 = vld [vmem:[%s927_s1 + $0x8] sm:$0xff]  ;;  %v623_v19 = vmov 0.0   ;;  %vm624_vm12 = vmmov 1   ;;  %v114_v52 = vlaneseq }
   0xf   :  { %v678_v1 = vld [vmem:[%s927_s1] sm:$0xff]  ;;  %v35_v3 = vunpack.c.0.s8 %v34_v0  ;;  %v36_v4 = vunpack.c.1.s8 %v34_v0  ;;  %v37_v5 = vunpack.c.2.s8 %v34_v0  ;;  %v38_v6 = vunpack.c.3.s8 %v34_v0  ;;  %v688_v7 = vld [vmem:[%s927_s1 + $0x10] sm:$0xff]  ;;  %v693_v8 = vld [vmem:[%s927_s1 + $0x18] sm:$0xff]  ;;  %s626_s10 = smov 2   ;;  %s627_s11 = smov 4  }
  0x10   :  { %v52_v9 = vand.u32 2147483647, %v678_v1  ;;  %v53_v10 = vand.u32 2147483647, %v683_v2  ;;  %v54_v11 = vand.u32 2147483647, %v688_v7 }
  0x11   :  { %v698_v12 = vcvt.s32.f32 %v35_v3  ;;  %v700_v13 = vcvt.s32.f32 %v36_v4  ;;  %v702_v14 = vcvt.s32.f32 %v37_v5  ;;  %v704_v15 = vcvt.s32.f32 %v38_v6  ;;  %v51_v56 = vld [vmem:[%s928_s2] sm:$0x1]  ;;  %s625_s2 = smov 1   ;;  %s628_s12 = smov 8  }
  0x12   :  { %v55_v16 = vand.u32 2147483647, %v693_v8  ;;  %vm56_vm0 = vcmp.eq.f32.partialorder %v52_v9, inf  ;;  %vm57_vm1 = vcmp.eq.f32.partialorder %v53_v10, inf  ;;  %vm58_vm5 = vcmp.eq.f32.partialorder %v54_v11, inf  ;;  %s629_s13 = smov 16  }
  0x13   :  { %vm43_vm2 = vcmp.gt.f32.partialorder %v698_v12, 0.5  ;;  %vm44_vm3 = vcmp.gt.f32.partialorder %v700_v13, 0.5  ;;  %vm45_vm4 = vcmp.gt.f32.partialorder %v702_v14, 0.5  ;;  %vm46_vm6 = vcmp.gt.f32.partialorder %v704_v15, 0.5  ;;  %s630_s14 = smov 32   ;;  %s632_s15 = smov 64  }
  0x14   :  { %vm59_vm7 = vcmp.eq.f32.partialorder %v55_v16, inf  ;;  %vm713_vm8 = vmand %vm56_vm0, %vm43_vm2  ;;  %v115_v58 = vshrl.u32 %v114_v52, 7 }
  0x15   :  { %vm719_vm9 = vmand %vm57_vm1, %vm44_vm3  ;;  %v64_v20 = vsel %vm713_vm8, 1.0, %v623_v19  ;;  %v98_v21 = vsel %vm713_vm8, %v678_v1, 0.0 }
  0x16   :  { %vm731_vm10 = vmand %vm58_vm5, %vm45_vm4  ;;  %v65_v23 = vsel %vm719_vm9, 1.0, %v623_v19  ;;  %v99_v24 = vsel %vm719_vm9, %v683_v2, 0.0  ;;  %v116_v63 = vsub.s32 0, %v115_v58 }
  0x17   :  { %vm743_vm11 = vmand %vm59_vm7, %vm46_vm6  ;;  %v66_v26 = vsel %vm731_vm10, 1.0, %v623_v19  ;;  %v68_v27 = vadd.f32 %v65_v23, %v64_v20  ;;  %v100_v28 = vsel %vm731_vm10, %v688_v7, 0.0  ;;  %v102_v29 = vadd.f32 %v99_v24, %v98_v21 }
  0x18   :  { %v67_v30 = vsel %vm743_vm11, 1.0, %v623_v19  ;;  %vm77_vm13 = vmxor %vm713_vm8, %vm624_vm12  ;;  %v101_v31 = vsel %vm743_vm11, %v693_v8, 0.0 }
  0x19   :  { %v69_v32 = vadd.f32 %v68_v27, %v66_v26  ;;  %vm78_vm14 = vmxor %vm719_vm9, %vm624_vm12  ;;  %v103_v33 = vadd.f32 %v102_v29, %v100_v28 }
  0x1a   :  { %vm79_vm15 = vmxor %vm731_vm10, %vm624_vm12 }
  0x1b   :  { %v70_v34 = vadd.f32 %v69_v32, %v67_v30  ;;  %vm80_vm0 = vmxor %vm743_vm11, %vm624_vm12  ;;  %v104_v35 = vadd.f32 %v103_v33, %v101_v31 }
  0x1c   :  { %vm81_vm1 = vmand %vm43_vm2, %vm77_vm13 }
  0x1d   :  { %v71_v36 = vrot.slane %v70_v34, 4  ;;  %vm82_vm5 = vmand %vm44_vm3, %vm78_vm14  ;;  %v85_v37 = vsel %vm81_vm1, %v678_v1, 0.0  ;;  %v105_v38 = vrot.slane %v104_v35, 4 }
  0x1e   :  { %vm83_vm7 = vmand %vm45_vm4, %vm79_vm15  ;;  %v86_v39 = vsel %vm82_vm5, %v683_v2, 0.0 }
  0x1f   :  { %v72_v40 = vadd.f32 %v71_v36, %v70_v34  ;;  %vm84_vm12 = vmand %vm46_vm6, %vm80_vm0  ;;  %v87_v41 = vsel %vm83_vm7, %v688_v7, 0.0  ;;  %v89_v42 = vadd.f32 %v86_v39, %v85_v37  ;;  %v106_v43 = vadd.f32 %v105_v38, %v104_v35 }
  0x20   :  { %v88_v44 = vsel %vm84_vm12, %v693_v8, 0.0 }
  0x21   :  { %v90_v45 = vadd.f32 %v89_v42, %v87_v41  ;;  %v107_v46 = vrot.slane %v106_v43, 2  ;;  %v73_v47 = vrot.slane %v72_v40, 2 }
  0x23   :  { %v91_v48 = vadd.f32 %v90_v45, %v88_v44  ;;  %v108_v49 = vadd.f32 %v107_v46, %v106_v43  ;;  %v74_v53 = vadd.f32 %v73_v47, %v72_v40 }
  0x25   :  { %v92_v50 = vrot.slane %v91_v48, 4  ;;  %v109_v51 = vrot.slane %v108_v49, 1  ;;  %v75_v59 = vrot.slane %v74_v53, 1 }
  0x27   :  { %v93_v54 = vadd.f32 %v92_v50, %v91_v48  ;;  %v110_v55 = vadd.f32 %v109_v51, %v108_v49  ;;  %v76_v0 = vadd.f32 %v75_v59, %v74_v53 }
  0x29   :  { %v94_v57 = vrot.slane %v93_v54, 2  ;;  %v129_v61 = vadd.f32 %v110_v55, %v51_v56  ;;  %vm128_vm13 = vcmp.ne.f32.partialorder %v110_v55, %v110_v55  ;;  %vm123_vm14 = vcmp.eq.f32.partialorder %v76_v0, 1.0 }
  0x2a   :  { %vm111_vm15 = vcmp.eq.f32.partialorder %v76_v0, 0.0 }
  0x2b   :  { %v95_v60 = vadd.f32 %v94_v57, %v93_v54  ;;  %v130_v4 = vsel %vm128_vm13, 0.0, %v129_v61 }
  0x2c   :  { %v136_v6 = vrot.slane %v130_v4, %v116_v63 }
  0x2d   :  { %v96_v62 = vrot.slane %v95_v60, 1 }
  0x2f   :  { %v97_v3 = vadd.f32 %v96_v62, %v95_v60 }
  0x31   :  { %v112_v5 = vadd.f32 %v97_v3, %v51_v56 }
  0x33   :  { %v117_v9 = vrot.slane %v112_v5, %v116_v63 }
  0x35   :  { %v119_v10 = vsub.f32 %v117_v9, %v678_v1  ;;  %v124_v11 = vsel %vm713_vm8, %v117_v9, %v110_v55  ;;  %v121_v16 = vsub.f32 %v117_v9, %v688_v7  ;;  %v126_v20 = vsel %vm731_vm10, %v117_v9, %v110_v55 }
  0x36   :  { %v137_v21 = vsel %vm123_vm14, %v124_v11, %v136_v6  ;;  %v139_v23 = vsel %vm123_vm14, %v126_v20, %v136_v6  ;;  %v120_v24 = vsub.f32 %v117_v9, %v683_v2  ;;  %v125_v26 = vsel %vm719_vm9, %v117_v9, %v110_v55 }
  0x37   :  { %v143_v27 = vsel %vm111_vm15, %v119_v10, %v137_v21  ;;  %v145_v1 = vsel %vm111_vm15, %v121_v16, %v139_v23  ;;  %v138_v17 = vsel %vm123_vm14, %v125_v26, %v136_v6  ;;  %v122_v7 = vsub.f32 %v117_v9, %v693_v8 }
  0x38   :  { %v147_v22 = vsel %vm43_vm2, %v143_v27, 0.0  ;;  %v149_v28 = vsel %vm45_vm4, %v145_v1, 0.0  ;;  %v144_v29 = vsel %vm111_vm15, %v120_v24, %v138_v17  ;;  %v127_v2 = vsel %vm743_vm11, %v117_v9, %v110_v55 }
  0x39   :  { %500 = vtanh.f32 %v147_v22  ;;  %151 = vst [vmem:[#allocation5] sm:$0xff] %v147_v22  ;;  %153 = vst [vmem:[#allocation5 + $0x10] sm:$0xff] %v149_v28  ;;  %v148_v18 = vsel %vm44_vm3, %v144_v29, 0.0  ;;  %v140_v30 = vsel %vm123_vm14, %v127_v2, %v136_v6 }
  0x3a   :  { %502 = vtanh.f32 %v149_v28  ;;  %152 = vst [vmem:[#allocation5 + $0x8] sm:$0xff] %v148_v18  ;;  %v146_v8 = vsel %vm111_vm15, %v122_v7, %v140_v30  ;;  %v631_v28 = vmov 0  }
  0x3b   :  { %504 = vtanh.f32 %v148_v18  ;;  %v150_v31 = vsel %vm46_vm6, %v146_v8, 0.0  ;;  %498 = vset.pattern.permute.xlu1 %v631_v28  ;;  %499 = vset.pattern.permute.xlu0 %v631_v28 }
  0x3c   :  { %506 = vtanh.f32 %v150_v31  ;;  %154 = vst [vmem:[#allocation5 + $0x18] sm:$0xff] %v150_v31 }
  0x46   :  { %v501_v25 = vpop.eup %500 }
  0x47   :  { %v503_v32 = vpop.eup %502  ;;  %v812_v33 = vsel %vm43_vm2, %v501_v25, 1.0 }
  0x48   :  { %v505_v34 = vpop.eup %504  ;;  %vm167_vm8 = vcmp.eq.f32.partialorder %v812_v33, 0.0  ;;  %v817_v35 = vsel %vm45_vm4, %v503_v32, 1.0 }
  0x49   :  { %v507_v36 = vpop.eup %506  ;;  %v171_v37 = vsel %vm167_vm8, 1.0, %v812_v33  ;;  %vm169_vm9 = vcmp.eq.f32.partialorder %v817_v35, 0.0  ;;  %v825_v38 = vsel %vm44_vm3, %v505_v34, 1.0  ;;  %v271_v34 = vsel %vm167_vm8, 1.0, %v623_v19 }
  0x4a   :  { %175 = vrot.lane.b32.xlu0 %v171_v37, %s625_s2  ;;  %v173_v39 = vsel %vm169_vm9, 1.0, %v817_v35  ;;  %vm168_vm10 = vcmp.eq.f32.partialorder %v825_v38, 0.0  ;;  %v833_v40 = vsel %vm46_vm6, %v507_v36, 1.0  ;;  %v273_v36 = vsel %vm169_vm9, 1.0, %v623_v19 }
  0x4b   :  { %179 = vrot.lane.b32.xlu1 %v173_v39, %s625_s2  ;;  %v172_v41 = vsel %vm168_vm10, 1.0, %v825_v38  ;;  %vm170_vm11 = vcmp.eq.f32.partialorder %v833_v40, 0.0 }
  0x4c   :  { %v174_v42 = vsel %vm170_vm11, 1.0, %v833_v40 }
  0x4e   :  { %177 = vrot.lane.b32.xlu0 %v172_v41, %s625_s2 }
  0x4f   :  { %181 = vrot.lane.b32.xlu1 %v174_v42, %s625_s2 }
  0xbc   :  { %v176_v43 = vpop.permute.xlu0 %175 }
  0xbd   :  { %v183_v44 = vmul.f32 %v176_v43, %v171_v37  ;;  %v180_v45 = vpop.permute.xlu1 %179  ;;  %v274_v37 = vsel %vm170_vm11, 1.0, %v623_v19  ;;  %v156_v43 = vld [vmem:[%s929_s3 + $0x8] sm:$0xff] }
  0xbe   :  { %v185_v46 = vmul.f32 %v180_v45, %v173_v39  ;;  %v272_v39 = vsel %vm168_vm10, 1.0, %v623_v19 }
  0xbf   :  { %187 = vrot.lane.b32.xlu0 %v183_v44, %s626_s10 }
  0xc0   :  { %v178_v47 = vpop.permute.xlu0 %177 }
  0xc1   :  { %v184_v48 = vmul.f32 %v178_v47, %v172_v41  ;;  %v182_v49 = vpop.permute.xlu1 %181  ;;  %v155_v41 = vld [vmem:[%s929_s3] sm:$0xff] }
  0xc2   :  { %v186_v50 = vmul.f32 %v182_v49, %v174_v42  ;;  %v259_v42 = vmul.f32 2.0, %v155_v41  ;;  %v158_v49 = vld [vmem:[%s929_s3 + $0x18] sm:$0xff] }
  0xc3   :  { %191 = vrot.lane.b32.xlu0 %v185_v46, %s626_s10  ;;  %189 = vrot.lane.b32.xlu1 %v184_v48, %s626_s10 }
  0xc4   :  { %v263_v45 = vsub.f32 1.0, %v259_v42 }
  0xc7   :  { %193 = vrot.lane.b32.xlu1 %v186_v50, %s626_s10 }
 0x131   :  { %v188_v51 = vpop.permute.xlu0 %187 }
 0x132   :  { %v195_v52 = vmul.f32 %v188_v51, %v183_v44  ;;  %v157_v44 = vld [vmem:[%s929_s3 + $0x10] sm:$0xff]  ;;  %s633_s3 = smov [#allocation5]  }
 0x133   :  { %v261_v47 = vmul.f32 2.0, %v157_v44  ;;  %s442_s24 = sshll.u32 %s633_s3, 4  ;;  %s443_s24 = int_to_ptr.vmem [resolvable:$true] %s442_s24 }
 0x134   :  { %199 = vrot.lane.b32.xlu0 %v195_v52, %s627_s11  ;;  %s556_s25 = scalar_lea.vmem %s443_s24, 512  ;;  %p561_p6 = scmp.lt.s32.totalorder %s443_s24, %s443_s24 }
 0x135   :  { %v190_v53 = vpop.permute.xlu1 %189  ;;  %v192_v54 = vpop.permute.xlu0 %191  ;;  %p557_p5 = scmp.ne.s32.totalorder %s443_s24, %s556_s25  ;;  %p562_p7 = scmp.lt.s32.totalorder %s556_s25, %s556_s25 }
 0x136   :  { %v196_v55 = vmul.f32 %v190_v53, %v184_v48  ;;  %v197_v56 = vmul.f32 %v192_v54, %v185_v46  ;;  %v260_v46 = vmul.f32 2.0, %v156_v43  ;;  %v265_v53 = vsub.f32 1.0, %v261_v47 }
 0x137   :  { %v262_v54 = vmul.f32 2.0, %v158_v49  ;;  %p563_p8 = por %p562_p7, %p561_p6 }
 0x138   :  { %201 = vrot.lane.b32.xlu1 %v196_v55, %s627_s11  ;;  %203 = vrot.lane.b32.xlu0 %v197_v56, %s627_s11 }
 0x139   :  { %v194_v57 = vpop.permute.xlu1 %193  ;;  %p564_p9 = pnand %p563_p8, %p557_p5 }
 0x13a   :  { %v198_v58 = vmul.f32 %v194_v57, %v186_v50 }
 0x13c   :  { %205 = vrot.lane.b32.xlu1 %v198_v58, %s627_s11 }
 0x1a6   :  { %v200_v59 = vpop.permute.xlu0 %199 }
 0x1a7   :  { %v207_v60 = vmul.f32 %v200_v59, %v195_v52  ;;  %v264_v52 = vsub.f32 1.0, %v260_v46 }
 0x1a9   :  { %211 = vrot.lane.b32.xlu0 %v207_v60, %s628_s12 }
 0x1aa   :  { %v202_v61 = vpop.permute.xlu1 %201  ;;  %v204_v62 = vpop.permute.xlu0 %203 }
 0x1ab   :  { %v208_v63 = vmul.f32 %v202_v61, %v196_v55  ;;  %v209_v0 = vmul.f32 %v204_v62, %v197_v56  ;;  %v266_v61 = vsub.f32 1.0, %v262_v54 }
 0x1ad   :  { %213 = vrot.lane.b32.xlu1 %v208_v63, %s628_s12  ;;  %215 = vrot.lane.b32.xlu0 %v209_v0, %s628_s12 }
 0x1ae   :  { %v206_v3 = vpop.permute.xlu1 %205 }
 0x1af   :  { %v210_v4 = vmul.f32 %v206_v3, %v198_v58 }
 0x1b1   :  { %217 = vrot.lane.b32.xlu1 %v210_v4, %s628_s12 }
 0x21b   :  { %v212_v5 = vpop.permute.xlu0 %211 }
 0x21c   :  { %v219_v6 = vmul.f32 %v212_v5, %v207_v60 }
 0x21e   :  { %223 = vrot.lane.b32.xlu0 %v219_v6, %s629_s13 }
 0x21f   :  { %v214_v9 = vpop.permute.xlu1 %213  ;;  %v216_v10 = vpop.permute.xlu0 %215 }
 0x220   :  { %v220_v11 = vmul.f32 %v214_v9, %v208_v63  ;;  %v221_v16 = vmul.f32 %v216_v10, %v209_v0 }
 0x222   :  { %225 = vrot.lane.b32.xlu1 %v220_v11, %s629_s13  ;;  %227 = vrot.lane.b32.xlu0 %v221_v16, %s629_s13 }
 0x223   :  { %v218_v20 = vpop.permute.xlu1 %217 }
 0x224   :  { %v222_v21 = vmul.f32 %v218_v20, %v210_v4 }
 0x226   :  { %229 = vrot.lane.b32.xlu1 %v222_v21, %s629_s13 }
 0x290   :  { %v224_v23 = vpop.permute.xlu0 %223 }
 0x291   :  { %v231_v24 = vmul.f32 %v224_v23, %v219_v6 }
 0x293   :  { %235 = vrot.lane.b32.xlu0 %v231_v24, %s630_s14 }
 0x294   :  { %v226_v26 = vpop.permute.xlu1 %225  ;;  %v228_v27 = vpop.permute.xlu0 %227 }
 0x295   :  { %v232_v1 = vmul.f32 %v226_v26, %v220_v11  ;;  %v233_v17 = vmul.f32 %v228_v27, %v221_v16 }
 0x297   :  { %237 = vrot.lane.b32.xlu1 %v232_v1, %s630_s14  ;;  %239 = vrot.lane.b32.xlu0 %v233_v17, %s630_s14 }
 0x298   :  { %v230_v7 = vpop.permute.xlu1 %229 }
 0x299   :  { %v234_v22 = vmul.f32 %v230_v7, %v222_v21 }
 0x29b   :  { %241 = vrot.lane.b32.xlu1 %v234_v22, %s630_s14 }
 0x305   :  { %v236_v29 = vpop.permute.xlu0 %235 }
 0x306   :  { %v243_v2 = vmul.f32 %v236_v29, %v231_v24 }
 0x308   :  { %247 = vrot.lane.b32.xlu0 %v243_v2, %s632_s15 }
 0x309   :  { %v238_v18 = vpop.permute.xlu1 %237  ;;  %v240_v30 = vpop.permute.xlu0 %239 }
 0x30a   :  { %v244_v8 = vmul.f32 %v238_v18, %v232_v1  ;;  %v245_v31 = vmul.f32 %v240_v30, %v233_v17 }
 0x30c   :  { %249 = vrot.lane.b32.xlu1 %v244_v8, %s632_s15  ;;  %251 = vrot.lane.b32.xlu0 %v245_v31, %s632_s15 }
 0x30d   :  { %v242_v25 = vpop.permute.xlu1 %241 }
 0x30e   :  { %v246_v32 = vmul.f32 %v242_v25, %v234_v22 }
 0x310   :  { %253 = vrot.lane.b32.xlu1 %v246_v32, %s632_s15 }
 0x32b   :  { %275 = vadd.xlane.f32.xlu0 %v271_v34 }
 0x32f   :  { %279 = vadd.xlane.f32.xlu0 %v273_v36 }
 0x333   :  { %281 = vadd.xlane.f32.xlu0 %v274_v37 }
 0x334   :  { %277 = vadd.xlane.f32.xlu1 %v272_v39 }
 0x37a   :  { %v248_v48 = vpop.permute.xlu0 %247 }
 0x37b   :  { %v255_v50 = vmul.f32 %v248_v48, %v243_v2 }
 0x37d   :  { %v267_v51 = vmul.f32 %v263_v45, %v255_v50 }
 0x37e   :  { %v250_v55 = vpop.permute.xlu1 %249  ;;  %v252_v56 = vpop.permute.xlu0 %251 }
 0x37f   :  { %v256_v57 = vmul.f32 %v250_v55, %v244_v8  ;;  %v257_v58 = vmul.f32 %v252_v56, %v245_v31  ;;  %289 = vperm.xlu1 %498, %v267_v51  }
 0x381   :  { %v268_v59 = vmul.f32 %v264_v52, %v256_v57  ;;  %v269_v60 = vmul.f32 %v265_v53, %v257_v58 }
 0x382   :  { %v254_v62 = vpop.permute.xlu1 %253 }
 0x383   :  { %v258_v63 = vmul.f32 %v254_v62, %v246_v32  ;;  %294 = vperm.xlu0 %499, %v268_v59   ;;  %299 = vperm.xlu1 %498, %v269_v60  }
 0x385   :  { %v270_v0 = vmul.f32 %v266_v61, %v258_v63 }
 0x387   :  { %304 = vperm.xlu1 %498, %v270_v0  }
 0x388   :  { %567 = shalt.err (!%p564_p9)
}
 0x389   :  { %s634_s26 = smov 128   ;;  %508 = vrcp.f32 %v812_v33 }
 0x38a   :  { %448 = dma.vmem_to_hbm [thread:$0]  %s443_s24, 512, %s930_s4, [#allocation4], %s634_s26, %s634_s26, %s628_s12   ;;  %510 = vrcp.f32 %v817_v35 }
 0x38b   :  { %512 = vrcp.f32 %v825_v38  ;;  %s635_s4 = smov [#allocation6]  }
 0x38c   :  { %514 = vrcp.f32 %v833_v40  ;;  %s454_s29 = sshll.u32 %s635_s4, 4  ;;  %s455_s29 = int_to_ptr.vmem [resolvable:$true] %s454_s29 }
 0x38d   :  { %s576_s30 = scalar_lea.vmem %s455_s29, 512  ;;  %p581_p11 = scmp.lt.s32.totalorder %s455_s29, %s455_s29 }
 0x38e   :  { %p577_p10 = scmp.ne.s32.totalorder %s455_s29, %s576_s30  ;;  %p582_p12 = scmp.lt.s32.totalorder %s576_s30, %s576_s30 }
 0x390   :  { %p583_p13 = por %p582_p12, %p581_p11 }
 0x392   :  { %p584_p0 = pnand %p583_p13, %p577_p10 }
 0x396   :  { %v509_v6 = vpop.eup %508 }
 0x397   :  { %v511_v11 = vpop.eup %510 }
 0x398   :  { %v513_v21 = vpop.eup %512 }
 0x399   :  { %v515_v22 = vpop.eup %514 }
 0x3b4   :  { %v276_v3 = vpop.xlane.xlu0 %275 }
 0x3b5   :  { %vm315_vm0 = vcmp.eq.f32.partialorder %v276_v3, 1.0  ;;  %vm283_vm12 = vcmp.eq.f32.partialorder %v276_v3, 0.0 }
 0x3b6   :  { %vm327_vm5 = vmand %vm315_vm0, %vm167_vm8 }
 0x3b8   :  { %v280_v4 = vpop.xlane.xlu0 %279 }
 0x3b9   :  { %vm317_vm1 = vcmp.eq.f32.partialorder %v280_v4, 1.0  ;;  %vm285_vm8 = vcmp.eq.f32.partialorder %v280_v4, 0.0 }
 0x3ba   :  { %vm329_vm13 = vmand %vm317_vm1, %vm169_vm9 }
 0x3bc   :  { %v282_v9 = vpop.xlane.xlu0 %281 }
 0x3bd   :  { %v278_v5 = vpop.xlane.xlu1 %277  ;;  %vm318_vm14 = vcmp.eq.f32.partialorder %v282_v9, 1.0 }
 0x3be   :  { %vm316_vm7 = vcmp.eq.f32.partialorder %v278_v5, 1.0  ;;  %vm284_vm0 = vcmp.eq.f32.partialorder %v278_v5, 0.0  ;;  %vm330_vm9 = vmand %vm318_vm14, %vm170_vm11 }
 0x3bf   :  { %vm328_vm15 = vmand %vm316_vm7, %vm168_vm10  ;;  %vm286_vm10 = vcmp.eq.f32.partialorder %v282_v9, 0.0 }
 0x3fa   :  { %v290_v10 = vpop.permute.xlu1 %289 }
 0x3fb   :  { %v308_v16 = vmul.f32 %v509_v6, %v290_v10  ;;  %v331_v20 = vsel %vm327_vm5, %v290_v10, 0.0 }
 0x3fd   :  { %v343_v23 = vsel %vm283_vm12, %v308_v16, %v331_v20 }
 0x3fe   :  { %v351_v24 = vsub.f32 1.0, %v343_v23  ;;  %v300_v26 = vpop.permute.xlu1 %299  ;;  %v295_v27 = vpop.permute.xlu0 %294  ;;  %v347_v25 = vadd.f32 1.0, %v343_v23 }
 0x3ff   :  { %v312_v1 = vmul.f32 %v511_v11, %v300_v26  ;;  %v333_v33 = vsel %vm329_vm13, %v300_v26, 0.0  ;;  %v310_v17 = vmul.f32 %v513_v21, %v295_v27  ;;  %v332_v7 = vsel %vm328_vm15, %v295_v27, 0.0 }
 0x400   :  { %516 = vrcp.f32 %v351_v24 }
 0x401   :  { %v345_v28 = vsel %vm285_vm8, %v312_v1, %v333_v33  ;;  %v344_v29 = vsel %vm284_vm0, %v310_v17, %v332_v7 }
 0x402   :  { %v353_v2 = vsub.f32 1.0, %v345_v28  ;;  %v352_v35 = vsub.f32 1.0, %v344_v29  ;;  %v305_v18 = vpop.permute.xlu1 %304  ;;  %v349_v36 = vadd.f32 1.0, %v345_v28  ;;  %v348_v39 = vadd.f32 1.0, %v344_v29 }
 0x403   :  { %v314_v38 = vmul.f32 %v515_v22, %v305_v18  ;;  %v334_v30 = vsel %vm330_vm9, %v305_v18, 0.0 }
 0x404   :  { %518 = vrcp.f32 %v353_v2 }
 0x405   :  { %520 = vrcp.f32 %v352_v35  ;;  %v346_v8 = vsel %vm286_vm10, %v314_v38, %v334_v30 }
 0x406   :  { %v354_v31 = vsub.f32 1.0, %v346_v8  ;;  %v350_v43 = vadd.f32 1.0, %v346_v8 }
 0x408   :  { %522 = vrcp.f32 %v354_v31 }
 0x40d   :  { %v517_v32 = vpop.eup %516 }
 0x40e   :  { %v356_v34 = vmul.f32 %v517_v32, %v347_v25 }
 0x410   :  { %524 = vlog2.f32 %v356_v34 }
 0x411   :  { %v519_v37 = vpop.eup %518 }
 0x412   :  { %v521_v41 = vpop.eup %520  ;;  %v360_v42 = vmul.f32 %v519_v37, %v349_v36 }
 0x413   :  { %v358_v40 = vmul.f32 %v521_v41, %v348_v39 }
 0x414   :  { %526 = vlog2.f32 %v360_v42 }
 0x415   :  { %v523_v44 = vpop.eup %522  ;;  %528 = vlog2.f32 %v358_v40 }
 0x416   :  { %v362_v45 = vmul.f32 %v523_v44, %v350_v43 }
 0x418   :  { %530 = vlog2.f32 %v362_v45 }
 0x41d   :  { %v525_v46 = vpop.eup %524 }
 0x41e   :  { %v364_v47 = vmul.f32 0.6931472, %v525_v46 }
 0x420   :  { %v371_v48 = vmul.f32 0.5, %v364_v47 }
 0x421   :  { %v527_v49 = vpop.eup %526 }
 0x422   :  { %v529_v50 = vpop.eup %528  ;;  %v375_v51 = vsel %vm43_vm2, %v371_v48, 0.0  ;;  %v368_v52 = vmul.f32 0.6931472, %v527_v49 }
 0x423   :  { %v383_v53 = vand.u32 2147483647, %v375_v51  ;;  %379 = vst [vmem:[#allocation6] sm:$0xff] %v375_v51  ;;  %v366_v54 = vmul.f32 0.6931472, %v529_v50 }
 0x424   :  { %v373_v55 = vmul.f32 0.5, %v368_v52 }
 0x425   :  { %v531_v56 = vpop.eup %530  ;;  %v372_v57 = vmul.f32 0.5, %v366_v54  ;;  %vm891_vm11 = vcmp.eq.f32.partialorder %v383_v53, inf }
 0x426   :  { %v377_v59 = vsel %vm45_vm4, %v373_v55, 0.0  ;;  %v370_v60 = vmul.f32 0.6931472, %v531_v56  ;;  %v400_v3 = vsel %vm891_vm11, 0.0, %v375_v51  ;;  %v413_v14 = vsel %vm891_vm11, 1.0, %v623_v19 }
 0x427   :  { %v385_v61 = vand.u32 2147483647, %v377_v59  ;;  %381 = vst [vmem:[#allocation6 + $0x10] sm:$0xff] %v377_v59  ;;  %v376_v12 = vsel %vm44_vm3, %v372_v57, 0.0 }
 0x428   :  { %v384_v62 = vand.u32 2147483647, %v376_v12  ;;  %v391_v63 = vadd.f32 %v376_v12, %v375_v51  ;;  %380 = vst [vmem:[#allocation6 + $0x8] sm:$0xff] %v376_v12  ;;  %v374_v0 = vmul.f32 0.5, %v370_v60 }
 0x429   :  { %vm904_vm2 = vcmp.eq.f32.partialorder %v385_v61, inf }
 0x42a   :  { %vm388_vm4 = vcmp.eq.f32.partialorder %v384_v62, inf  ;;  %v378_v13 = vsel %vm46_vm6, %v374_v0, 0.0  ;;  %v392_v10 = vadd.f32 %v391_v63, %v377_v59 }
 0x42b   :  { %v401_v5 = vsel %vm388_vm4, 0.0, %v376_v12  ;;  %v414_v6 = vsel %vm388_vm4, 1.0, %v623_v19  ;;  %v386_v9 = vand.u32 2147483647, %v378_v13  ;;  %382 = vst [vmem:[#allocation6 + $0x18] sm:$0xff] %v378_v13 }
 0x42c   :  { %v404_v11 = vadd.f32 %v401_v5, %v400_v3  ;;  %v417_v16 = vadd.f32 %v414_v6, %v413_v14 }
 0x42d   :  { %587 = shalt.err (!%p584_p0)
}
 0x42e   :  { %460 = dma.vmem_to_hbm [thread:$0]  %s455_s29, 512, %s931_s5, [#allocation7], %s634_s26, %s634_s26, %s628_s12   ;;  %v402_v15 = vsel %vm904_vm2, 0.0, %v377_v59  ;;  %v415_v20 = vsel %vm904_vm2, 1.0, %v623_v19  ;;  %vm390_vm3 = vcmp.eq.f32.partialorder %v386_v9, inf  ;;  %v393_v21 = vadd.f32 %v392_v10, %v378_v13 }
 0x42f   :  { %v403_v23 = vsel %vm390_vm3, 0.0, %v378_v13  ;;  %v405_v24 = vadd.f32 %v404_v11, %v402_v15  ;;  %v416_v26 = vsel %vm390_vm3, 1.0, %v623_v19  ;;  %v418_v27 = vadd.f32 %v417_v16, %v415_v20  ;;  %s636_s5 = smov [#allocation8]  }
 0x430   :  { %v394_v1 = vrot.slane %v393_v21, 4  ;;  %s467_s8 = sshll.u32 %s636_s5, 4  ;;  %s468_s8 = int_to_ptr.vmem [resolvable:$true] %s467_s8 }
 0x431   :  { %v406_v33 = vadd.f32 %v405_v24, %v403_v23  ;;  %v419_v17 = vadd.f32 %v418_v27, %v416_v26  ;;  %s596_s1 = scalar_lea.vmem %s468_s8, 32  ;;  %p601_p2 = scmp.lt.s32.totalorder %s468_s8, %s468_s8 }
 0x432   :  { %v395_v7 = vadd.f32 %v394_v1, %v393_v21  ;;  %p597_p1 = scmp.ne.s32.totalorder %s468_s8, %s596_s1  ;;  %p602_p3 = scmp.lt.s32.totalorder %s596_s1, %s596_s1 }
 0x433   :  { %v407_v22 = vrot.slane %v406_v33, 4  ;;  %v420_v28 = vrot.slane %v419_v17, 4 }
 0x434   :  { %v396_v29 = vrot.slane %v395_v7, 2  ;;  %p603_p4 = por %p602_p3, %p601_p2 }
 0x435   :  { %v408_v2 = vadd.f32 %v407_v22, %v406_v33  ;;  %v421_v18 = vadd.f32 %v420_v28, %v419_v17 }
 0x436   :  { %v397_v35 = vadd.f32 %v396_v29, %v395_v7  ;;  %p604_p5 = pnand %p603_p4, %p597_p1 }
 0x437   :  { %v409_v38 = vrot.slane %v408_v2, 2  ;;  %v422_v25 = vrot.slane %v421_v18, 2 }
 0x438   :  { %v398_v30 = vrot.slane %v397_v35, 1 }
 0x439   :  { %v410_v8 = vadd.f32 %v409_v38, %v408_v2  ;;  %v423_v19 = vadd.f32 %v422_v25, %v421_v18 }
 0x43a   :  { %v399_v31 = vadd.f32 %v398_v30, %v397_v35 }
 0x43b   :  { %v411_v32 = vrot.slane %v410_v8, 1  ;;  %v424_v36 = vrot.slane %v423_v19, 1 }
 0x43c   :  { %532 = vtanh.f32 %v399_v31 }
 0x43d   :  { %v412_v34 = vadd.f32 %v411_v32, %v410_v8  ;;  %v425_v37 = vadd.f32 %v424_v36, %v423_v19 }
 0x43f   :  { %534 = vtanh.f32 %v412_v34  ;;  %vm428_vm1 = vcmp.gt.f32.partialorder %v425_v37, 0.0 }
 0x449   :  { %v533_v39 = vpop.eup %532 }
 0x44a   :  { %vm427_vm6 = vcmp.ne.f32.partialorder %v533_v39, %v533_v39 }
 0x44b   :  { %vm429_vm5 = vmand %vm427_vm6, %vm428_vm1 }
 0x44c   :  { %v535_v41 = vpop.eup %534 }
 0x44d   :  { %v431_v42 = vsel %vm429_vm5, %v535_v41, %v533_v39 }
 0x44e   :  { %v432_v40 = vmul.f32 0.5, %v431_v42 }
 0x450   :  { %v433_v43 = vadd.f32 0.5, %v432_v40  ;;  %v435_v44 = vsub.f32 0.5, %v432_v40 }
 0x452   :  { %434 = vst [vmem:[#allocation8] sm:$0x1] %v433_v43  ;;  %436 = vst [vmem:[#allocation8 + $0x1] sm:$0x1] %v435_v44 }
 0x453   :  { %607 = shalt.err (!%p604_p5)
}
 0x454   :  { %470 = dma.vmem_to_hbm [thread:$0]  %s468_s8, 32, %s932_s6, [#allocation7]  }
 0x455   :  { %618 = dma.done.wait [#allocation4], 512  }
 0x456   :  { %619 = vsyncadd [#allocation4], 4294966784 }
 0x457   :  { %620 = dma.done.wait [#allocation7], 544  }
 0x458   :  { %621 = vsyncadd [#allocation7], 4294966752 }
 0x459   :  { %480 = vsyncpa [#allocation3], 1 }
 0x45a   :  { %481 = vsyncpa [#allocation4], 1 }
 0x45b   :  { %482 = vsyncpa [#allocation7], 1 }

</bundles_post_ra>
